<compile_context>
chip_gen: v5e
topology: v5e:2x2
jax: 0.10.0
libtpu: 0.0.40
codegen_flags: <defaults>
</compile_context>

<pallas_src>
import functools

import jax
import jax.numpy as jnp
from jax import lax
from jax.experimental import pallas as pl
from jax.experimental.pallas import tpu as pltpu

EPS = 1e-8

_VMEM_LIMIT_BYTES = 48 * 1024 * 1024      # safe on v5e/v6e (128 MiB) and v7x (64 MiB)
_TARGET_BLOCK_BYTES = 2 * 1024 * 1024     # ~2 MiB of VMEM per input block
_MAX_BLOCK_BYTES = 4 * 1024 * 1024        # hard cap (double-buffered x2 inputs fits easily)


def _round_up(x, m):
    return (x + m - 1) // m * m


# ------------------------------------------------------------------ kernels

def _mcl_kernel_row(p1_ref, p2_ref, lab_ref, out_ref, *, n_valid, tn, mask_tail):
    """Row-major layout: blocks are (TN, C); label block is (TN, 1)."""
    p1 = p1_ref[...].astype(jnp.float32)                    # (TN, C)
    p2 = p2_ref[...].astype(jnp.float32)                    # (TN, C)
    lab = lab_ref[...].astype(jnp.float32)                  # (TN, 1)

    p = jnp.sum(p1 * p2, axis=1, keepdims=True)             # (TN, 1)
    p = p * lab + (lab == -1.0).astype(jnp.float32)

    if mask_tail:                                           # only compiled when N % TN != 0
        i = pl.program_id(0)
        rows = i * tn + lax.broadcasted_iota(jnp.int32, (tn, 1), 0)
        valid = rows < n_valid
        p = jnp.where(valid, p, 1.0)                        # mask BEFORE log (NaN-safe)
        neglog = jnp.where(valid, -jnp.log(p + EPS), 0.0)   # exact zero contribution
    else:
        neglog = -jnp.log(p + EPS)

    part = jnp.sum(neglog)                                  # one small cross-lane reduce
    out_ref[...] = jnp.broadcast_to(part, out_ref.shape).astype(out_ref.dtype)


def _mcl_kernel_lane(p1_ref, p2_ref, lab_ref, out_ref, *, n_valid, tl, mask_tail):
    """Lane-dense layout for tiny C: blocks are (C, TL); label block is (1, TL)."""
    p1 = p1_ref[...].astype(jnp.float32)                    # (C, TL)
    p2 = p2_ref[...].astype(jnp.float32)                    # (C, TL)
    lab = lab_ref[...].astype(jnp.float32)                  # (1, TL)

    p = jnp.sum(p1 * p2, axis=0, keepdims=True)             # (1, TL)
    p = p * lab + (lab == -1.0).astype(jnp.float32)

    if mask_tail:
        i = pl.program_id(0)
        cols = i * tl + lax.broadcasted_iota(jnp.int32, (1, tl), 1)
        valid = cols < n_valid
        p = jnp.where(valid, p, 1.0)
        neglog = jnp.where(valid, -jnp.log(p + EPS), 0.0)
    else:
        neglog = -jnp.log(p + EPS)

    part = jnp.sum(neglog)
    out_ref[...] = jnp.broadcast_to(part, out_ref.shape).astype(out_ref.dtype)


# ----------------------------------------------------------------- wrappers

def _mcl_row_major(prob1, prob2, lab_col, n, c, tile):
    itemsize = jnp.dtype(prob1.dtype).itemsize
    # VMEM footprint per row (minor dim is lane-padded to 128 lanes).
    row_bytes = max(c, 128) * itemsize
    tn_cap = max(8, (_MAX_BLOCK_BYTES // row_bytes) // 8 * 8)
    tn_def = max(8, (_TARGET_BLOCK_BYTES // row_bytes) // 8 * 8)
    tn = _round_up(int(tile), 8) if tile is not None else tn_def
    tn = min(tn, tn_cap, _round_up(n, 8))

    n_tiles = pl.cdiv(n, tn)
    mask_tail = (n % tn) != 0

    kernel = functools.partial(_mcl_kernel_row, n_valid=n, tn=tn, mask_tail=mask_tail)
    partials = pl.pallas_call(
        kernel,
        out_shape=jax.ShapeDtypeStruct((n_tiles, 1, 128), jnp.float32),
        grid_spec=pltpu.PrefetchScalarGridSpec(
            num_scalar_prefetch=0,
            grid=(n_tiles,),
            in_specs=[
                pl.BlockSpec((tn, c), lambda i: (i, 0)),
                pl.BlockSpec((tn, c), lambda i: (i, 0)),
                pl.BlockSpec((tn, 1), lambda i: (i, 0)),
            ],
            out_specs=pl.BlockSpec((1, 1, 128), lambda i: (i, 0, 0)),
        ),
        compiler_params=pltpu.CompilerParams(
            dimension_semantics=("parallel",),
            vmem_limit_bytes=_VMEM_LIMIT_BYTES),
    )(prob1, prob2, lab_col)
    return jnp.sum(partials[:, 0, 0]) * (1.0 / n)


def _mcl_lane_major(prob1, prob2, lab_row, n, c, tile):
    itemsize = jnp.dtype(prob1.dtype).itemsize
    col_bytes = _round_up(c, 8) * itemsize                  # sublane-padded column footprint
    tl_cap = max(128, (_MAX_BLOCK_BYTES // col_bytes) // 128 * 128)
    tl_def = max(128, (_TARGET_BLOCK_BYTES // col_bytes) // 128 * 128)
    tl = _round_up(int(tile), 128) if tile is not None else tl_def
    tl = min(tl, tl_cap, _round_up(n, 128))

    n_tiles = pl.cdiv(n, tl)
    mask_tail = (n % tl) != 0

    # Transpose only for tiny C: lane density there is worth one extra HBM copy.
    p1t = prob1.T                                           # (C, N)
    p2t = prob2.T

    kernel = functools.partial(_mcl_kernel_lane, n_valid=n, tl=tl, mask_tail=mask_tail)
    partials = pl.pallas_call(
        kernel,
        out_shape=jax.ShapeDtypeStruct((n_tiles, 1, 128), jnp.float32),
        grid_spec=pltpu.PrefetchScalarGridSpec(
            num_scalar_prefetch=0,
            grid=(n_tiles,),
            in_specs=[
                pl.BlockSpec((c, tl), lambda i: (0, i)),
                pl.BlockSpec((c, tl), lambda i: (0, i)),
                pl.BlockSpec((1, tl), lambda i: (0, i)),
            ],
            out_specs=pl.BlockSpec((1, 1, 128), lambda i: (i, 0, 0)),
        ),
        compiler_params=pltpu.CompilerParams(
            dimension_semantics=("parallel",),
            vmem_limit_bytes=_VMEM_LIMIT_BYTES),
    )(p1t, p2t, lab_row)
    return jnp.sum(partials[:, 0, 0]) * (1.0 / n)


def mcl_loss(prob1, prob2, s_label, *, tile=None):
    """Pallas implementation of MCL.forward. Returns a scalar float32."""
    assert prob1.shape == prob2.shape and prob1.ndim == 2
    n, c = prob1.shape
    lab = s_label.reshape(-1).astype(jnp.float32)
    assert lab.shape[0] == n

    if c <= 16:
        # tiny class count: lane-dense (C, N) path
        return _mcl_lane_major(prob1, prob2, lab.reshape(1, n), n, c, tile)
    # common case: read (N, C) directly, no wrapper transpose / pad
    return _mcl_row_major(prob1, prob2, lab.reshape(n, 1), n, c, tile)


def _mcl_ref(prob1, prob2, s_label):
    """Pure-JAX reference for verification."""
    p1 = prob1.astype(jnp.float32)
    p2 = prob2.astype(jnp.float32)
    p = jnp.sum(p1 * p2, axis=1)
    p = p * s_label + (s_label == -1).astype(jnp.float32)
    return jnp.mean(-jnp.log(p + EPS))


if __name__ == "__main__":
    key = jax.random.PRNGKey(0)
    k1, k2, k3, k4, k5, k6 = jax.random.split(key, 6)

    def make_inputs(kp1, kp2, kl, n, c, dtype=jnp.float32):
        p1 = jax.nn.softmax(jax.random.normal(kp1, (n, c), jnp.float32), axis=1)
        p2 = jax.nn.softmax(jax.random.normal(kp2, (n, c), jnp.float32), axis=1)
        lab = jnp.where(jax.random.bernoulli(kl, 0.5, (n,)), 1.0, -1.0)
        return p1.astype(dtype), p2.astype(dtype), lab.astype(jnp.float32)

    ok = True

    # 1) typical small usage: C=32 -> row-major (N, C) path, single tile
    p1, p2, lab = make_inputs(k1, k2, k3, 16, 32)
    got = jax.block_until_ready(mcl_loss(p1, p2, lab))
    ref = _mcl_ref(p1, p2, lab)
    ok &= bool(jnp.allclose(got, ref, rtol=1e-5, atol=1e-6))

    # 2) C >= 128 row-major path, multi-tile with ragged tail (in-kernel mask)
    p1, p2, lab = make_inputs(k4, k5, k6, 40, 160)
    got = jax.block_until_ready(mcl_loss(p1, p2, lab, tile=16))
    ref = _mcl_ref(p1, p2, lab)
    ok &= bool(jnp.allclose(got, ref, rtol=1e-5, atol=1e-6))

    # 3) tiny C -> lane-dense (C, N) path, bf16 inputs, multi-tile + ragged tail
    p1, p2, lab = make_inputs(k1, k5, k3, 300, 8, dtype=jnp.bfloat16)
    got = jax.block_until_ready(mcl_loss(p1, p2, lab, tile=128))
    ref = _mcl_ref(p1, p2, lab)
    ok &= bool(jnp.allclose(got, ref, rtol=1e-5, atol=1e-6))

    # 4) row-major path with bf16 inputs, multi-tile + ragged tail
    p1, p2, lab = make_inputs(k2, k6, k4, 300, 32, dtype=jnp.bfloat16)
    got = jax.block_until_ready(mcl_loss(p1, p2, lab, tile=64))
    ref = _mcl_ref(p1, p2, lab)
    ok &= bool(jnp.allclose(got, ref, rtol=1e-5, atol=1e-6))

    assert ok, "Pallas MCL does not match reference"
    print("KERNEL_OK")
</pallas_src>

<mosaic_0001>
module attributes {stable_mosaic.version = 11 : i64} {
  func.func @_mcl_kernel_row(%arg0: i32, %arg1: memref<16x32xf32, #tpu.memory_space<vmem>>, %arg2: memref<16x32xf32, #tpu.memory_space<vmem>>, %arg3: memref<16x1xf32, #tpu.memory_space<vmem>>, %arg4: memref<1x1x128xf32, #tpu.memory_space<vmem>>) attributes {dimension_semantics = [#tpu.dimension_semantics<parallel>], iteration_bounds = array<i64: 1>, scalar_prefetch = 0 : i64, scratch_operands = 0 : i64, tpu.core_type = #tpu.core_type<tc>, window_params = [{transform_indices = @transform_0, window_bounds = array<i64: 16, 32>}, {transform_indices = @transform_1, window_bounds = array<i64: 16, 32>}, {transform_indices = @transform_2, window_bounds = array<i64: 16, 1>}, {transform_indices = @transform_3, window_bounds = array<i64: 1, 1, 128>}]} {
    %c0 = arith.constant 0 : index
    %c0_0 = arith.constant 0 : index
    %0 = vector.load %arg1[%c0, %c0_0] : memref<16x32xf32, #tpu.memory_space<vmem>>, vector<16x32xf32>
    %c0_1 = arith.constant 0 : index
    %c0_2 = arith.constant 0 : index
    %1 = vector.load %arg2[%c0_1, %c0_2] : memref<16x32xf32, #tpu.memory_space<vmem>>, vector<16x32xf32>
    %c0_3 = arith.constant 0 : index
    %c0_4 = arith.constant 0 : index
    %2 = vector.load %arg3[%c0_3, %c0_4] : memref<16x1xf32, #tpu.memory_space<vmem>>, vector<16x1xf32>
    %3 = arith.mulf %0, %1 : vector<16x32xf32>
    %cst = arith.constant dense<0.000000e+00> : vector<16xf32>
    %4 = vector.multi_reduction <add>, %3, %cst [1] : vector<16x32xf32> to vector<16xf32>
    %5 = vector.shape_cast %4 : vector<16xf32> to vector<16x1xf32>
    %6 = arith.mulf %5, %2 : vector<16x1xf32>
    %cst_5 = arith.constant -1.000000e+00 : f32
    %7 = vector.broadcast %cst_5 : f32 to vector<16x1xf32>
    %8 = arith.cmpf oeq, %2, %7 : vector<16x1xf32>
    %9 = arith.extui %8 : vector<16x1xi1> to vector<16x1xi32>
    %10 = arith.sitofp %9 : vector<16x1xi32> to vector<16x1xf32>
    %11 = arith.addf %6, %10 : vector<16x1xf32>
    %cst_6 = arith.constant 9.99999993E-9 : f32
    %12 = vector.broadcast %cst_6 : f32 to vector<16x1xf32>
    %13 = arith.addf %11, %12 : vector<16x1xf32>
    %14 = math.log %13 : vector<16x1xf32>
    %cst_7 = arith.constant 0.000000e+00 : f32
    %15 = vector.broadcast %cst_7 : f32 to vector<16x1xf32>
    %16 = arith.subf %15, %14 : vector<16x1xf32>
    %17 = vector.shape_cast %16 : vector<16x1xf32> to vector<1x16x1xf32>
    %cst_8 = arith.constant dense<0.000000e+00> : vector<1xf32>
    %18 = vector.multi_reduction <add>, %17, %cst_8 [1, 2] : vector<1x16x1xf32> to vector<1xf32>
    %19 = vector.shape_cast %18 : vector<1xf32> to vector<1x1x1xf32>
    %20 = vector.extract %19[0, 0, 0] : f32 from vector<1x1x1xf32>
    %21 = vector.broadcast %20 : f32 to vector<1x1x128xf32>
    %c0_9 = arith.constant 0 : index
    %c0_10 = arith.constant 0 : index
    %c0_11 = arith.constant 0 : index
    %22 = vector.load %arg4[%c0_9, %c0_10, %c0_11] : memref<1x1x128xf32, #tpu.memory_space<vmem>>, vector<1x1x128xf32>
    tpu.vector_store %arg4[%c0_9, %c0_10, %c0_11], %21 {strides = array<i32>} : memref<1x1x128xf32, #tpu.memory_space<vmem>>, vector<1x1x128xf32>,
    return
  }
  func.func @transform_0(%arg0: i32) -> (i32, i32) {
    %c0_i32 = arith.constant 0 : i32
    %c0_i32_0 = arith.constant 0 : i32
    return %arg0, %c0_i32 : i32, i32
  }
  func.func @transform_1(%arg0: i32) -> (i32, i32) {
    %c0_i32 = arith.constant 0 : i32
    %c0_i32_0 = arith.constant 0 : i32
    return %arg0, %c0_i32 : i32, i32
  }
  func.func @transform_2(%arg0: i32) -> (i32, i32) {
    %c0_i32 = arith.constant 0 : i32
    %c0_i32_0 = arith.constant 0 : i32
    return %arg0, %c0_i32 : i32, i32
  }
  func.func @transform_3(%arg0: i32) -> (i32, i32, i32) {
    %c0_i32 = arith.constant 0 : i32
    %c0_i32_0 = arith.constant 0 : i32
    %c0_i32_1 = arith.constant 0 : i32
    return %arg0, %c0_i32, %c0_i32_0 : i32, i32, i32
  }
}

</mosaic_0001>

<bundles_post_ra>
// kernel: tpu_custom_call.1
= control target key start
LH: loop header
LB: loop body
LE: loop exit
PB: predicated region body
PF: predicated region fallthrough
CT: control target
= control target key end

     0   :  { %8 = vsyncpa [#allocation3], 0  ;;  %s204_s0 = inlined_call_operand.vmem [shape: f32[16,32], index: 0, kind: input, shape index: {}]   ;;  %s205_s1 = inlined_call_operand.hbm [shape: f32[16,32], index: 1, kind: input, shape index: {}]   ;;  %s206_s2 = inlined_call_operand.vmem [shape: f32[16,1], index: 2, kind: input, shape index: {}]   ;;  %s207_s3 = inlined_call_operand.hbm [shape: f32[1,1,128], index: 3, kind: output, shape index: {}]  }
   0x1   :  { %9 = vsyncpa [#allocation4], 0  ;;  %s16_s14 = sshll.u32 %s205_s1, 4  ;;  %s161_s15 = smov [#allocation2]   ;;  %s17_s14 = int_to_ptr.hbm [resolvable:$true] %s16_s14 }
   0x2   :  { %s18_s16 = sshll.u32 %s161_s15, 4  ;;  %s162_s17 = smov 128   ;;  %s19_s16 = int_to_ptr.vmem [resolvable:$true] %s18_s16 }
   0x3   :  { %s163_s18 = smov 8  }
   0x4   :  { %24 = dma.hbm_to_vmem [thread:$0]  %s17_s14, 256, %s19_s16, [#allocation3], %s162_s17, %s162_s17, %s163_s18  }
   0x5   :  { %157 = dma.done.wait [#allocation3], 256  }
   0x6   :  { %158 = vsyncadd [#allocation3], 4294967040  ;;  %v31_v0 = vld [vmem:[%s204_s0] sm:$0xff]  ;;  %vm39_vm0 = vcmask 261120   ;;  %v32_v3 = vld [vmem:[%s204_s0 + $0x8] sm:$0xff]  ;;  %v164_v9 = vmov 0.0  }
   0x7   :  { %v33_v1 = vld [vmem:[#allocation2] sm:$0xff]  ;;  %v34_v4 = vld [vmem:[#allocation2 + $0x8] sm:$0xff]  ;;  %vm64_vm3 = vcmask 7168   ;;  %s165_s0 = smov [#allocation5]   ;;  %s86_s28 = sshll.u32 %s207_s3, 4  ;;  %s87_s28 = int_to_ptr.hbm [resolvable:$true] %s86_s28 }
   0x8   :  { %v37_v2 = vmul.f32 %v33_v1, %v31_v0  ;;  %v38_v6 = vmul.f32 %v34_v4, %v32_v3  ;;  %v35_v8 = vld [vmem:[%s206_s2] sm:$0xff]  ;;  %v36_v13 = vld [vmem:[%s206_s2 + $0x8] sm:$0xff]  ;;  %s84_s2 = sshll.u32 %s165_s0, 4  ;;  %s85_s2 = int_to_ptr.vmem [resolvable:$true] %s84_s2 }
   0x9   :  { %vm48_vm1 = vcmp.eq.f32.partialorder %v35_v8, -1.0  ;;  %vm49_vm2 = vcmp.eq.f32.partialorder %v36_v13, -1.0 }
   0xa   :  { %v40_v5 = vsel %vm39_vm0, %v37_v2, 0.0  ;;  %v43_v7 = vsel %vm39_vm0, %v38_v6, 0.0  ;;  %v96_v10 = vsel %vm48_vm1, 1.0, %v164_v9  ;;  %v97_v16 = vsel %vm49_vm2, 1.0, %v164_v9 }
   0xb   :  { %41 = vadd.xlane.f32.xlu0 %v40_v5 }
  0x13   :  { %44 = vadd.xlane.f32.xlu0 %v43_v7 }
  0x7e   :  { %v42_v11 = vpop.xlane.xlu0 %41 }
  0x7f   :  { %v46_v12 = vmul.f32 %v42_v11, %v35_v8 }
  0x81   :  { %v54_v14 = vadd.f32 %v96_v10, %v46_v12 }
  0x83   :  { %v56_v15 = vadd.f32 1e-08, %v54_v14 }
  0x85   :  { %105 = vlog2.f32 %v56_v15 }
  0x86   :  { %v45_v17 = vpop.xlane.xlu0 %44 }
  0x87   :  { %v47_v18 = vmul.f32 %v45_v17, %v36_v13 }
  0x89   :  { %v55_v19 = vadd.f32 %v97_v16, %v47_v18 }
  0x8b   :  { %v57_v20 = vadd.f32 1e-08, %v55_v19  ;;  %v106_v21 = vpop.eup %105 }
  0x8c   :  { %v59_v22 = vmul.f32 0.6931472, %v106_v21 }
  0x8d   :  { %107 = vlog2.f32 %v57_v20 }
  0x8e   :  { %v62_v25 = vsub.f32 0.0, %v59_v22 }
  0x90   :  { %v65_v27 = vsel %vm64_vm3, %v62_v25, 0.0 }
  0x93   :  { %v108_v23 = vpop.eup %107 }
  0x94   :  { %v61_v24 = vmul.f32 0.6931472, %v108_v23 }
  0x96   :  { %v63_v26 = vsub.f32 0.0, %v61_v24 }
  0x98   :  { %v66_v28 = vsel %vm64_vm3, %v63_v26, 0.0 }
  0x99   :  { %v67_v29 = vadd.f32 %v66_v28, %v65_v27 }
  0x9b   :  { %68 = vadd.xlane.f32.xlu1 %v67_v29 }
 0x10e   :  { %v69_v30 = vpop.xlane.xlu1 %68 }
 0x10f   :  { %v70_v31 = vrot.slane %v69_v30, 4 }
 0x111   :  { %v71_v32 = vadd.f32 %v70_v31, %v69_v30 }
 0x113   :  { %v72_v33 = vrot.slane %v71_v32, 2 }
 0x115   :  { %v73_v34 = vadd.f32 %v72_v33, %v71_v32 }
 0x117   :  { %v74_v35 = vrot.slane %v73_v34, 1 }
 0x119   :  { %v75_v36 = vadd.f32 %v74_v35, %v73_v34 }
 0x11b   :  { %98 = vpush %v75_v36 }
 0x14c   :  { %s99_s29 = spop %98 }
 0x14d   :  { %v77_v37 = vstv %s99_s29 }
 0x14e   :  { %78 = vst [vmem:[#allocation5] sm:$0x1] %v77_v37 }
 0x14f   :  { %89 = dma.vmem_to_hbm [thread:$0]  %s85_s2, 16, %s87_s28, [#allocation4]  }
 0x150   :  { %159 = dma.done.wait [#allocation4], 16  }
 0x151   :  { %160 = vsyncadd [#allocation4], 4294967280 }
 0x152   :  { %94 = vsyncpa [#allocation3], 1 }
 0x153   :  { %95 = vsyncpa [#allocation4], 1 }

</bundles_post_ra>
